<compile_context>
chip_gen: v7x
topology: tpu7x:2x2x1
jax: 0.10.0
libtpu: 0.0.40
codegen_flags: <defaults>
</compile_context>

<pallas_src>
import jax
import jax.numpy as jnp
from jax.experimental import pallas as pl
from jax.experimental.pallas import tpu as pltpu


def _cdiv(a, b):
    return -(-a // b)


def _round_up(n, m):
    return ((n + m - 1) // m) * m


def _pad2d(a, rows, cols):
    r, c = a.shape
    return jnp.pad(a, ((0, rows - r), (0, cols - c)))


def _rbf_kernel_resident(x_ref, ct_ref, rc_ref, nb_ref, wt_ref, b_ref, o_ref):
    x = x_ref[...]                                                    # (TB, Dp) f32
    # 2*beta*(x @ c^T) on the MXU (centers pre-scaled + pre-transposed; f32 for accuracy).
    xc = jnp.dot(x, ct_ref[...], preferred_element_type=jnp.float32)  # (TB, Up)
    x_sq = jnp.sum(x * x, axis=-1, keepdims=True)                     # (TB, 1)
    # exponent = -beta*||x-c||^2, clamped at 0 (equivalent to clamping dist at 0).
    expo = jnp.minimum(xc + rc_ref[...] + nb_ref[...] * x_sq, 0.0)
    rbf = jnp.exp(expo)                                               # f32 EUP exp
    # Second matmul in bf16 (safe: rbf in [0,1], no downstream amplification);
    # W^T is already bf16, accumulate in f32.
    out = jnp.dot(rbf.astype(wt_ref.dtype), wt_ref[...],
                  preferred_element_type=jnp.float32) + b_ref[...]
    o_ref[...] = out.astype(o_ref.dtype)


def _rbf_kernel_utiled(x_ref, ct_ref, rc_ref, nb_ref, wt_ref, b_ref, o_ref, acc_ref):
    j = pl.program_id(1)

    @pl.when(j == 0)
    def _():
        acc_ref[...] = jnp.zeros_like(acc_ref)

    x = x_ref[...]
    xc = jnp.dot(x, ct_ref[...], preferred_element_type=jnp.float32)
    x_sq = jnp.sum(x * x, axis=-1, keepdims=True)
    expo = jnp.minimum(xc + rc_ref[...] + nb_ref[...] * x_sq, 0.0)
    rbf = jnp.exp(expo)
    acc_ref[...] += jnp.dot(rbf.astype(wt_ref.dtype), wt_ref[...],
                            preferred_element_type=jnp.float32)

    @pl.when(j == pl.num_programs(1) - 1)
    def _():
        o_ref[...] = (acc_ref[...] + b_ref[...]).astype(o_ref.dtype)


def rbfnet_cd_forward(x, centers, log_beta, fc_weight, fc_bias, *, block_b=512):
    """Forward of RBFNet_cd.

    x: (B, D); centers: (U, D); log_beta: (U,); fc_weight: (O, U); fc_bias: (O,).
    Returns (B, O) float32.
    """
    B, D = x.shape
    U = centers.shape[0]
    O = fc_weight.shape[0]

    # Lane-aligned padded sizes.
    Dp = _round_up(D, 128)
    Up = _round_up(U, 128)
    Op = _round_up(O, 128)

    # --- Balanced batch tiling; >=2 grid steps for large B so v7x's two TensorCores
    # both get work (the extra step is ~0.35us on 1-TC chips => harmless). ---
    n_tiles = _cdiv(B, block_b)
    if B > 256:
        n_tiles = max(n_tiles, 2)
    TB = _round_up(_cdiv(B, n_tiles), 8)
    Bp = _round_up(B, TB)

    # --- Generation-aware VMEM budget (v7x: 64 MiB/TC, v5e/v6e: 128 MiB). ---
    try:
        vmem_cap = int(pltpu.get_tpu_info().vmem_capacity_bytes)
    except Exception:
        vmem_cap = 64 * 1024 * 1024          # conservative fallback: v7x per-TC VMEM
    budget = int(vmem_cap * 0.85)
    slack = 1 << 20

    # Buffer plan accounting: x/out double-buffered; constant-index operands
    # single-buffered (pl.Buffered(1)); W^T stored in bf16 (2 bytes).
    io_bytes = 2 * 4 * TB * (Dp + Op)
    resident_w_bytes = 4 * Dp * Up + 2 * Up * Op + 4 * (2 * Up + Op)
    temp_resident = 4 * TB * (3 * Up + Op)   # headroom for per-step intermediates
    need_resident = resident_w_bytes + io_bytes + temp_resident + slack
    use_resident = need_resident <= budget

    TU = Up
    if not use_resident:
        # Weight set too large to stay resident (typical only on v7x / very large U):
        # stream U-tiles double-buffered and accumulate into a (TB, Op) f32 scratch.
        def _need_u(tu):
            return (2 * (4 * Dp * tu + 2 * tu * Op + 2 * 4 * tu)   # streamed u-tiles, 2 bufs
                    + 4 * Op                                       # bias, single buffer
                    + 4 * TB * Op                                  # accumulator scratch
                    + io_bytes + 4 * TB * (3 * tu + Op) + slack)
        while TU > 128 and _need_u(TU) > budget:
            TU = max(128, _round_up(TU // 2, 128))
        Up = _round_up(Up, TU)               # harmless extra padded units (see below)
        need = _need_u(TU)
    else:
        need = need_resident

    vmem_limit = max(1 << 20, min(budget, need + (8 << 20)))

    # --- Hoisted / folded per-call constants. ---
    f32 = jnp.float32
    beta = jax.nn.softplus(log_beta.astype(f32))                     # (U,) > 0
    nbeta = -beta
    c = centers.astype(f32)
    c_sq = jnp.sum(c * c, axis=-1)                                   # (U,)

    # exponent = x @ (2*beta*c)^T + (-beta*||c||^2) + (-beta)*||x||^2, clamped at <= 0.
    ct_scaled = _pad2d((c * (2.0 * beta)[:, None]).T, Dp, Up)        # (Dp, Up) f32
    row_const = _pad2d((nbeta * c_sq).reshape(1, U), 1, Up)          # (1, Up) f32
    nbeta_p = _pad2d(nbeta.reshape(1, U), 1, Up)                     # (1, Up) f32
    # NOTE: padded units (u >= U) have all constants == 0 -> exponent == 0 -> rbf == 1.
    # Correctness depends on the ZERO-padded rows of w_t below masking those units.
    w_t = _pad2d(fc_weight.astype(f32).T, Up, Op).astype(jnp.bfloat16)   # (Up, Op) bf16
    bias = _pad2d(fc_bias.astype(f32).reshape(1, O), 1, Op)          # (1, Op) f32
    x_p = _pad2d(x.astype(f32), Bp, Dp)                              # (Bp, Dp) f32

    cost = pl.CostEstimate(
        flops=2 * Bp * Up * (Dp + Op) + 4 * Bp * Up,
        transcendentals=Bp * Up,
        bytes_accessed=4 * Bp * (Dp + Op) + 4 * Dp * Up + 2 * Up * Op
                       + 4 * (2 * Up + Op),
    )

    if use_resident:
        grid = (Bp // TB,)
        in_specs = [
            pl.BlockSpec((TB, Dp), lambda i: (i, 0)),                               # x
            pl.BlockSpec((Dp, Up), lambda i: (0, 0), pipeline_mode=pl.Buffered(1)),  # 2*beta*c^T
            pl.BlockSpec((1, Up), lambda i: (0, 0), pipeline_mode=pl.Buffered(1)),   # -beta*||c||^2
            pl.BlockSpec((1, Up), lambda i: (0, 0), pipeline_mode=pl.Buffered(1)),   # -beta
            pl.BlockSpec((Up, Op), lambda i: (0, 0), pipeline_mode=pl.Buffered(1)),  # W^T (bf16)
            pl.BlockSpec((1, Op), lambda i: (0, 0), pipeline_mode=pl.Buffered(1)),   # bias
        ]
        out_specs = pl.BlockSpec((TB, Op), lambda i: (i, 0))
        out_padded = pl.pallas_call(
            _rbf_kernel_resident,
            out_shape=jax.ShapeDtypeStruct((Bp, Op), jnp.float32),
            grid=grid,
            in_specs=in_specs,
            out_specs=out_specs,
            compiler_params=pltpu.CompilerParams(
                dimension_semantics=("parallel",),
                vmem_limit_bytes=vmem_limit,
            ),
            cost_estimate=cost,
        )(x_p, ct_scaled, row_const, nbeta_p, w_t, bias)
    else:
        grid = (Bp // TB, Up // TU)
        in_specs = [
            pl.BlockSpec((TB, Dp), lambda i, j: (i, 0)),                                # x
            pl.BlockSpec((Dp, TU), lambda i, j: (0, j)),                                # 2*beta*c^T tile
            pl.BlockSpec((1, TU), lambda i, j: (0, j)),                                 # row const tile
            pl.BlockSpec((1, TU), lambda i, j: (0, j)),                                 # -beta tile
            pl.BlockSpec((TU, Op), lambda i, j: (j, 0)),                                # W^T tile (bf16)
            pl.BlockSpec((1, Op), lambda i, j: (0, 0), pipeline_mode=pl.Buffered(1)),   # bias
        ]
        out_specs = pl.BlockSpec((TB, Op), lambda i, j: (i, 0))
        out_padded = pl.pallas_call(
            _rbf_kernel_utiled,
            out_shape=jax.ShapeDtypeStruct((Bp, Op), jnp.float32),
            grid=grid,
            in_specs=in_specs,
            out_specs=out_specs,
            scratch_shapes=[pltpu.VMEM((TB, Op), jnp.float32)],
            compiler_params=pltpu.CompilerParams(
                dimension_semantics=("parallel", "arbitrary"),
                vmem_limit_bytes=vmem_limit,
            ),
            cost_estimate=cost,
        )(x_p, ct_scaled, row_const, nbeta_p, w_t, bias)

    return out_padded[:B, :O]


def _xavier_uniform(key, shape):
    fan_out, fan_in = shape
    limit = jnp.sqrt(6.0 / (fan_in + fan_out))
    return jax.random.uniform(key, shape, jnp.float32, -limit, limit)


if __name__ == "__main__":
    # Shapes consistent with RBFNet_cd(input_size, rbf_units, output_size).
    batch = 8
    input_size = 32
    rbf_units = 64
    output_size = 16

    key = jax.random.PRNGKey(0)
    k_c, k_n, k_w = jax.random.split(key, 3)

    # Parameters (mirroring the torch __init__):
    centers = jax.random.uniform(k_c, (rbf_units, input_size), jnp.float32, -1.0, 1.0)
    log_beta = jnp.full((rbf_units,), jnp.log(18.2), jnp.float32)
    fc_weight = _xavier_uniform(k_w, (output_size, rbf_units))
    fc_bias = jnp.zeros((output_size,), jnp.float32)

    # Inputs near the centers so the RBF activations are non-trivially > 0 (beta ~ 18.2).
    x = centers[:batch] + 0.05 * jax.random.normal(k_n, (batch, input_size), jnp.float32)

    fwd = jax.jit(rbfnet_cd_forward)
    out = jax.block_until_ready(fwd(x, centers, log_beta, fc_weight, fc_bias))

    # Pure-JAX reference mirroring the torch forward exactly.
    diff = x[:, None, :] - centers[None, :, :]
    dist = jnp.sum(diff * diff, axis=-1)
    ref = jnp.exp(-jax.nn.softplus(log_beta)[None, :] * dist) @ fc_weight.T + fc_bias

    assert out.shape == (batch, output_size)
    assert bool(jnp.all(jnp.isfinite(out)))
    assert jnp.allclose(out, ref, atol=3e-3, rtol=3e-3), float(jnp.max(jnp.abs(out - ref)))

    print("KERNEL_OK")
</pallas_src>

<mosaic_0001>
module attributes {stable_mosaic.version = 11 : i64} {
  func.func @_rbf_kernel_resident(%arg0: i32, %arg1: memref<8x128xf32, #tpu.memory_space<vmem>>, %arg2: memref<128x128xf32, #tpu.memory_space<vmem>>, %arg3: memref<1x128xf32, #tpu.memory_space<vmem>>, %arg4: memref<1x128xf32, #tpu.memory_space<vmem>>, %arg5: memref<128x128xbf16, #tpu.memory_space<vmem>>, %arg6: memref<1x128xf32, #tpu.memory_space<vmem>>, %arg7: memref<8x128xf32, #tpu.memory_space<vmem>>) attributes {dimension_semantics = [#tpu.dimension_semantics<parallel>], iteration_bounds = array<i64: 1>, scalar_prefetch = 0 : i64, scratch_operands = 0 : i64, tpu.core_type = #tpu.core_type<tc>, window_params = [{transform_indices = @transform_0, window_bounds = array<i64: 8, 128>}, {pipeline_mode = #tpu.pipeline_mode<synchronous>, transform_indices = @transform_1, window_bounds = array<i64: 128, 128>}, {pipeline_mode = #tpu.pipeline_mode<synchronous>, transform_indices = @transform_2, window_bounds = array<i64: 1, 128>}, {pipeline_mode = #tpu.pipeline_mode<synchronous>, transform_indices = @transform_3, window_bounds = array<i64: 1, 128>}, {pipeline_mode = #tpu.pipeline_mode<synchronous>, transform_indices = @transform_4, window_bounds = array<i64: 128, 128>}, {pipeline_mode = #tpu.pipeline_mode<synchronous>, transform_indices = @transform_5, window_bounds = array<i64: 1, 128>}, {transform_indices = @transform_6, window_bounds = array<i64: 8, 128>}]} {
    %c0 = arith.constant 0 : index
    %c0_0 = arith.constant 0 : index
    %0 = vector.load %arg1[%c0, %c0_0] : memref<8x128xf32, #tpu.memory_space<vmem>>, vector<8x128xf32>
    %c0_1 = arith.constant 0 : index
    %c0_2 = arith.constant 0 : index
    %1 = vector.load %arg2[%c0_1, %c0_2] : memref<128x128xf32, #tpu.memory_space<vmem>>, vector<128x128xf32>
    %cst = arith.constant dense<0.000000e+00> : vector<8x128xf32>
    %2 = tpu.matmul %0, %1, %cst {dimension_numbers = #tpu.dot_dimension_numbers<[1], [0], [0], [1], [0, 0, 1, 1], [], []>} : vector<8x128xf32>, vector<128x128xf32>, vector<8x128xf32> -> vector<8x128xf32>
    %3 = arith.mulf %0, %0 : vector<8x128xf32>
    %cst_3 = arith.constant dense<0.000000e+00> : vector<8xf32>
    %4 = vector.multi_reduction <add>, %3, %cst_3 [1] : vector<8x128xf32> to vector<8xf32>
    %5 = vector.shape_cast %4 : vector<8xf32> to vector<8x1xf32>
    %c0_4 = arith.constant 0 : index
    %c0_5 = arith.constant 0 : index
    %6 = vector.load %arg3[%c0_4, %c0_5] : memref<1x128xf32, #tpu.memory_space<vmem>>, vector<1x128xf32>
    %7 = vector.broadcast %6 : vector<1x128xf32> to vector<8x128xf32>
    %8 = arith.addf %2, %7 : vector<8x128xf32>
    %c0_6 = arith.constant 0 : index
    %c0_7 = arith.constant 0 : index
    %9 = vector.load %arg4[%c0_6, %c0_7] : memref<1x128xf32, #tpu.memory_space<vmem>>, vector<1x128xf32>
    %10 = vector.broadcast %9 : vector<1x128xf32> to vector<8x128xf32>
    %11 = vector.broadcast %5 : vector<8x1xf32> to vector<8x128xf32>
    %12 = arith.mulf %10, %11 : vector<8x128xf32>
    %13 = arith.addf %8, %12 : vector<8x128xf32>
    %cst_8 = arith.constant 0.000000e+00 : f32
    %14 = vector.broadcast %cst_8 : f32 to vector<8x128xf32>
    %15 = arith.minimumf %13, %14 : vector<8x128xf32>
    %16 = math.exp %15 : vector<8x128xf32>
    %17 = arith.truncf %16 : vector<8x128xf32> to vector<8x128xbf16>
    %c0_9 = arith.constant 0 : index
    %c0_10 = arith.constant 0 : index
    %18 = vector.load %arg5[%c0_9, %c0_10] : memref<128x128xbf16, #tpu.memory_space<vmem>>, vector<128x128xbf16>
    %cst_11 = arith.constant dense<0.000000e+00> : vector<8x128xf32>
    %19 = tpu.matmul %17, %18, %cst_11 {dimension_numbers = #tpu.dot_dimension_numbers<[1], [0], [0], [1], [0, 0, 1, 1], [], []>} : vector<8x128xbf16>, vector<128x128xbf16>, vector<8x128xf32> -> vector<8x128xf32>
    %c0_12 = arith.constant 0 : index
    %c0_13 = arith.constant 0 : index
    %20 = vector.load %arg6[%c0_12, %c0_13] : memref<1x128xf32, #tpu.memory_space<vmem>>, vector<1x128xf32>
    %21 = vector.broadcast %20 : vector<1x128xf32> to vector<8x128xf32>
    %22 = arith.addf %19, %21 : vector<8x128xf32>
    %c0_14 = arith.constant 0 : index
    %c0_15 = arith.constant 0 : index
    %23 = vector.load %arg7[%c0_14, %c0_15] : memref<8x128xf32, #tpu.memory_space<vmem>>, vector<8x128xf32>
    tpu.vector_store %arg7[%c0_14, %c0_15], %22 {strides = array<i32>} : memref<8x128xf32, #tpu.memory_space<vmem>>, vector<8x128xf32>,
    return
  }
  func.func @transform_0(%arg0: i32) -> (i32, i32) {
    %c0_i32 = arith.constant 0 : i32
    %c0_i32_0 = arith.constant 0 : i32
    return %arg0, %c0_i32 : i32, i32
  }
  func.func @transform_1(%arg0: i32) -> (i32, i32) {
    %c0_i32 = arith.constant 0 : i32
    %c0_i32_0 = arith.constant 0 : i32
    %c0_i32_1 = arith.constant 0 : i32
    return %c0_i32, %c0_i32_0 : i32, i32
  }
  func.func @transform_2(%arg0: i32) -> (i32, i32) {
    %c0_i32 = arith.constant 0 : i32
    %c0_i32_0 = arith.constant 0 : i32
    %c0_i32_1 = arith.constant 0 : i32
    return %c0_i32, %c0_i32_0 : i32, i32
  }
  func.func @transform_3(%arg0: i32) -> (i32, i32) {
    %c0_i32 = arith.constant 0 : i32
    %c0_i32_0 = arith.constant 0 : i32
    %c0_i32_1 = arith.constant 0 : i32
    return %c0_i32, %c0_i32_0 : i32, i32
  }
  func.func @transform_4(%arg0: i32) -> (i32, i32) {
    %c0_i32 = arith.constant 0 : i32
    %c0_i32_0 = arith.constant 0 : i32
    %c0_i32_1 = arith.constant 0 : i32
    return %c0_i32, %c0_i32_0 : i32, i32
  }
  func.func @transform_5(%arg0: i32) -> (i32, i32) {
    %c0_i32 = arith.constant 0 : i32
    %c0_i32_0 = arith.constant 0 : i32
    %c0_i32_1 = arith.constant 0 : i32
    return %c0_i32, %c0_i32_0 : i32, i32
  }
  func.func @transform_6(%arg0: i32) -> (i32, i32) {
    %c0_i32 = arith.constant 0 : i32
    %c0_i32_0 = arith.constant 0 : i32
    return %arg0, %c0_i32 : i32, i32
  }
}

</mosaic_0001>

<bundles_post_ra>
// kernel: rbfnet_cd_forward.1
= control target key start
LH: loop header
LB: loop body
LE: loop exit
PB: predicated region body
PF: predicated region fallthrough
CT: control target
= control target key end

     0   :  { %v415_v3 = vmov 0.0|0.0   ;;  %vm416_vm0 = vmmov 0   ;;  %v417_v6 = vmov 0.0   ;;  %s560_s0 = inlined_call_operand.vmem [shape: f32[8,128], index: 0, kind: input, shape index: {}]   ;;  %s561_s1 = inlined_call_operand.vmem [shape: f32[128,128], index: 1, kind: input, shape index: {}]   ;;  %s562_s2 = inlined_call_operand.vmem [shape: f32[1,128], index: 2, kind: input, shape index: {}]   ;;  %s563_s3 = inlined_call_operand.vmem [shape: f32[1,128], index: 3, kind: input, shape index: {}]   ;;  %s564_s4 = inlined_call_operand.vmem [shape: bf16[128,128], index: 4, kind: input, shape index: {}]   ;;  %s565_s5 = inlined_call_operand.vmem [shape: f32[1,128], index: 5, kind: input, shape index: {}]   ;;  %s566_s6 = inlined_call_operand.hbm [shape: f32[8,128], index: 6, kind: output, shape index: {}]  }
   0x1   :  { %v26_v0 = vld [vmem:[%s561_s1] sm:$0xff]  ;;  %v27_v1 = vld [vmem:[%s561_s1 + $0x8] sm:$0xff]  ;;  %v28_v2 = vld [vmem:[%s561_s1 + $0x10] sm:$0xff]  ;;  %353 = vmatprep.subr.bf16.mxu0 %v415_v3  ;;  %330 = vmatprep.mubr.msk.f32.mxu0 %vm416_vm0, %v417_v6 }
   0x2   :  { %v354_v4 = vpack.c.bf16 %v27_v1, %v26_v0  ;;  %v29_v5 = vld [vmem:[%s561_s1 + $0x18] sm:$0xff]  ;;  %333 = vmatprep.subr.bf16.mxu1 %v417_v6  ;;  %349 = vmatprep.mubr.msk.bf16.mxu1 %vm416_vm0, %v417_v6  ;;  %v30_v8 = vld [vmem:[%s561_s1 + $0x20] sm:$0xff]  ;;  %v31_v9 = vld [vmem:[%s561_s1 + $0x28] sm:$0xff] }
   0x3   :  { %v357_v7 = vpack.c.bf16 %v29_v5, %v28_v2  ;;  %v25_v10 = vld [vmem:[%s560_s0] sm:$0xff]  ;;  %v32_v11 = vld [vmem:[%s561_s1 + $0x30] sm:$0xff]  ;;  %v360_v14 = vpack.c.bf16 %v31_v9, %v30_v8  ;;  %v33_v15 = vld [vmem:[%s561_s1 + $0x38] sm:$0xff] }
   0x4   :  { %355 = vmatpush3.bf16.msra.mxu0 %v354_v4  ;;  %v42_v12 = vmul.f32 %v25_v10, %v25_v10  ;;  %v381_v13 = vld [vmem:[%s564_s4] sm:$0xff]   ;;  %v382_v16 = vld [vmem:[%s564_s4 + $0x8] sm:$0xff]   ;;  %v363_v17 = vpack.c.bf16 %v33_v15, %v32_v11 }
   0x5   :  { %356 = vmatprep.subr.bf16.mxu0 %v415_v3  ;;  %334 = vmatpush3.bf16.msra.mxu1 %v381_v13  ;;  %v34_v18 = vld [vmem:[%s561_s1 + $0x40] sm:$0xff]  ;;  %v35_v19 = vld [vmem:[%s561_s1 + $0x48] sm:$0xff] }
   0x6   :  { %43 = vadd.xlane.f32.xlu0 %v42_v12  ;;  %335 = vmatprep.subr.bf16.mxu1 %v417_v6 }
   0x8   :  { %358 = vmatpush3.bf16.msra.mxu0 %v357_v7 }
   0x9   :  { %359 = vmatprep.subr.bf16.mxu0 %v415_v3 }
   0xc   :  { %361 = vmatpush3.bf16.msra.mxu0 %v360_v14 }
   0xd   :  { %362 = vmatprep.subr.bf16.mxu0 %v415_v3 }
   0xe   :  { %11 = vsyncpa [#allocation3], 0  ;;  %336 = vmatpush3.bf16.msra.mxu1 %v382_v16  ;;  %v383_v20 = vld [vmem:[%s564_s4 + $0x10] sm:$0xff]   ;;  %v366_v21 = vpack.c.bf16 %v35_v19, %v34_v18  ;;  %v37_v23 = vld [vmem:[%s561_s1 + $0x58] sm:$0xff] }
   0xf   :  { %337 = vmatprep.subr.bf16.mxu1 %v417_v6  ;;  %v36_v22 = vld [vmem:[%s561_s1 + $0x50] sm:$0xff]  ;;  %v38_v25 = vld [vmem:[%s561_s1 + $0x60] sm:$0xff]  ;;  %v39_v26 = vld [vmem:[%s561_s1 + $0x68] sm:$0xff] }
  0x10   :  { %364 = vmatpush3.bf16.msra.mxu0 %v363_v17  ;;  %v369_v24 = vpack.c.bf16 %v37_v23, %v36_v22  ;;  %v372_v27 = vpack.c.bf16 %v39_v26, %v38_v25  ;;  %v40_v28 = vld [vmem:[%s561_s1 + $0x70] sm:$0xff]  ;;  %v41_v29 = vld [vmem:[%s561_s1 + $0x78] sm:$0xff]  ;;  %v385_v32 = vld [vmem:[%s564_s4 + $0x20] sm:$0xff]  }
  0x11   :  { %365 = vmatprep.subr.bf16.mxu0 %v415_v3  ;;  %v375_v30 = vpack.c.bf16 %v41_v29, %v40_v28  ;;  %v384_v31 = vld [vmem:[%s564_s4 + $0x18] sm:$0xff]   ;;  %v386_v33 = vld [vmem:[%s564_s4 + $0x28] sm:$0xff]   ;;  %v387_v34 = vld [vmem:[%s564_s4 + $0x30] sm:$0xff]  }
  0x12   :  { %338 = vmatpush3.bf16.msra.mxu1 %v383_v20  ;;  %v388_v35 = vld [vmem:[%s564_s4 + $0x38] sm:$0xff]   ;;  %v262_v37 = vld [vmem:[%s563_s3] ss:$0 sm:$0xff]  ;;  %s418_s3 = smov [#allocation2]  }
  0x13   :  { %339 = vmatprep.subr.bf16.mxu1 %v417_v6  ;;  %v261_v38 = vld [vmem:[%s562_s2] ss:$0 sm:$0xff]  ;;  %s253_s25 = sshll.u32 %s418_s3, 4  ;;  %s254_s25 = int_to_ptr.vmem [resolvable:$true] %s253_s25 }
  0x14   :  { %367 = vmatpush3.bf16.msra.mxu0 %v366_v21  ;;  %v263_v48 = vld [vmem:[%s565_s5] ss:$0 sm:$0xff]  ;;  %s391_s2 = scalar_lea.vmem %s254_s25, 128  ;;  %p396_p1 = scmp.lt.s32.totalorder %s254_s25, %s254_s25 }
  0x15   :  { %368 = vmatprep.subr.bf16.mxu0 %v415_v3  ;;  %p392_p0 = scmp.ne.s32.totalorder %s254_s25, %s391_s2  ;;  %p397_p2 = scmp.lt.s32.totalorder %s391_s2, %s391_s2 }
  0x16   :  { %340 = vmatpush3.bf16.msra.mxu1 %v384_v31 }
  0x17   :  { %341 = vmatprep.subr.bf16.mxu1 %v417_v6  ;;  %p398_p3 = por %p397_p2, %p396_p1 }
  0x18   :  { %370 = vmatpush3.bf16.msra.mxu0 %v369_v24 }
  0x19   :  { %371 = vmatprep.subr.bf16.mxu0 %v415_v3  ;;  %p399_p4 = pnand %p398_p3, %p392_p0 }
  0x1a   :  { %342 = vmatpush3.bf16.msra.mxu1 %v385_v32 }
  0x1b   :  { %343 = vmatprep.subr.bf16.mxu1 %v417_v6 }
  0x1c   :  { %373 = vmatpush3.bf16.msra.mxu0 %v372_v27 }
  0x1d   :  { %374 = vmatprep.subr.bf16.mxu0 %v415_v3 }
  0x1e   :  { %344 = vmatpush3.bf16.msra.mxu1 %v386_v33 }
  0x1f   :  { %345 = vmatprep.subr.bf16.mxu1 %v417_v6 }
  0x20   :  { %376 = vmatpush3.bf16.msra.mxu0 %v375_v30 }
  0x22   :  { %346 = vmatpush3.bf16.msra.mxu1 %v387_v34 }
  0x23   :  { %331 = vmatmul.mubr.f32.vlgmr.msra.gmra.mrb[0].mxu0 %v25_v10  ;;  %347 = vmatprep.subr.bf16.mxu1 %v417_v6 }
  0x26   :  { %348 = vmatpush3.bf16.msra.mxu1 %v388_v35 }
  0x93   :  { %v44_v36 = vpop.xlane.xlu0 %43 }
  0x94   :  { %v129_v39 = vmul.f32 %v262_v37, %v44_v36 }
  0xf6   :  { %v118_v40 = vpop.f32.mrb[0].mxu0 }
  0xf7   :  { %v119_v41 = vadd.f32 %v261_v38, %v118_v40  ;;  %v332_v42 = vpop.f32.mrb[1].mxu0 }
  0xf9   :  { %v130_v43 = vadd.f32 %v129_v39, %v119_v41 }
  0xfb   :  { %v131_v44 = vmin.f32 %v130_v43, 0.0 }
  0xfd   :  { %v132_v45 = vmul.f32 1.442695, %v131_v44 }
  0xff   :  { %389 = vpow2.f32 %v132_v45 }
 0x109   :  { %v390_v46 = vpop.eup %389 }
 0x10a   :  { %v134_v47 = vpack.c.bf16 %v390_v46, %v390_v46 }
 0x10c   :  { %350 = vmatmul.mubr.bf16.vlgmr.msra.gmra.mrb[0].mxu1 %v134_v47 }
 0x1df   :  { %v240_v49 = vpop.f32.mrb[0].mxu1 }
 0x1e0   :  { %v241_v50 = vadd.f32 %v263_v48, %v240_v49  ;;  %v351_v51 = vpop.f32.mrb[1].mxu1 }
 0x1e1   :  { %v243_v52 = vpop.f32.mrb[2].mxu1 }
 0x1e2   :  { %246 = vst [vmem:[#allocation2] sm:$0xff] %v241_v50  ;;  %v352_v53 = vpop.f32.mrb[3].mxu1 }
 0x1e3   :  { %402 = shalt.err (!%p399_p4)
}
 0x1e4   :  { %s403_s5 = scalar_lea.hbm %s566_s6, 128 }
 0x1e5   :  { %p404_p5 = scmp.ne.s32.totalorder %s566_s6, %s403_s5  ;;  %p407_p6 = scmp.lt.u32.totalorder %s403_s5, %s566_s6 }
 0x1e7   :  { %p409_p7 = pnand %p407_p6, %p404_p5 }
 0x1e9   :  { %412 = shalt.err (!%p409_p7)
}
 0x1ea   :  { %256 = dma.vmem_to_hbm [thread:$0]  %s254_s25, 128, %s566_s6, [#allocation3]  }
 0x1eb   :  { %413 = dma.done.wait [#allocation3], 128  }
 0x1ec   :  { %414 = vsyncadd [#allocation3], 4294967168 }
 0x1ed   :  { %260 = vsyncpa [#allocation3], 1 }

</bundles_post_ra>
